<compile_context>
chip_gen: v7x
topology: tpu7x:2x2x1
jax: 0.10.0
libtpu: 0.0.40
codegen_flags: <defaults>
</compile_context>

<pallas_src>
import functools

import jax
import jax.numpy as jnp
from jax.experimental import pallas as pl
from jax.experimental.pallas import tpu as pltpu

EPS = 1e-5  # torch.nn.InstanceNorm3d default eps


def _stats_psi_kernel(s_total, tile_s, has_pad, use_mxu_psi,
                      g_ref, x_ref, wg_ref, wx_ref, wp_ref,
                      ppre_ref, pmu_ref, pinv_ref,
                      gram_g_ref, gram_x_ref, rsum_g_ref, rsum_x_ref,
                      wgf_ref, wxf_ref, cbias_ref, sp_ref, spp_ref):
    pass_id = pl.program_id(1)
    s_id = pl.program_id(2)
    last_s = pl.num_programs(2) - 1
    inv_s = jnp.float32(1.0 / s_total)

    # ---- pass 0: moments of g and x via rowsums + Gram matrices (MXU) ----
    @pl.when((pass_id == 0) & (s_id == 0))
    def _zero_moments():
        gram_g_ref[...] = jnp.zeros_like(gram_g_ref)
        gram_x_ref[...] = jnp.zeros_like(gram_x_ref)
        rsum_g_ref[...] = jnp.zeros_like(rsum_g_ref)
        rsum_x_ref[...] = jnp.zeros_like(rsum_x_ref)

    @pl.when(pass_id == 0)
    def _pass0():
        gt = g_ref[0]                                     # [F_g, TS], native dtype
        xt = x_ref[0]                                     # [F_l, TS]
        dn = (((1,), (1,)), ((), ()))                     # contract the lane axis
        gram_g_ref[...] += jax.lax.dot_general(
            gt, gt, dn, preferred_element_type=jnp.float32)
        gram_x_ref[...] += jax.lax.dot_general(
            xt, xt, dn, preferred_element_type=jnp.float32)
        rsum_g_ref[...] += jnp.sum(gt, axis=1, keepdims=True, dtype=jnp.float32)
        rsum_x_ref[...] += jnp.sum(xt, axis=1, keepdims=True, dtype=jnp.float32)

    # ---- fold InstanceNorm(g1) / InstanceNorm(x1) into the conv weights ----
    @pl.when((pass_id == 1) & (s_id == 0))
    def _fold():
        wg32 = wg_ref[...].astype(jnp.float32)            # [F_int, F_g]
        wx32 = wx_ref[...].astype(jnp.float32)            # [F_int, F_l]
        sum_g1 = jnp.dot(wg32, rsum_g_ref[...], preferred_element_type=jnp.float32)
        sum_x1 = jnp.dot(wx32, rsum_x_ref[...], preferred_element_type=jnp.float32)
        ssq_g1 = jnp.sum(
            jnp.dot(wg32, gram_g_ref[...], preferred_element_type=jnp.float32) * wg32,
            axis=1, keepdims=True)
        ssq_x1 = jnp.sum(
            jnp.dot(wx32, gram_x_ref[...], preferred_element_type=jnp.float32) * wx32,
            axis=1, keepdims=True)
        mu_g = sum_g1 * inv_s
        mu_x = sum_x1 * inv_s
        var_g = jnp.maximum(ssq_g1 * inv_s - mu_g * mu_g, 0.0)
        var_x = jnp.maximum(ssq_x1 * inv_s - mu_x * mu_x, 0.0)
        sc_g = jax.lax.rsqrt(var_g + EPS)
        sc_x = jax.lax.rsqrt(var_x + EPS)
        wgf_ref[...] = sc_g * wg32
        wxf_ref[...] = sc_x * wx32
        cbias_ref[...] = sc_g * mu_g + sc_x * mu_x
        sp_ref[...] = jnp.zeros_like(sp_ref)
        spp_ref[...] = jnp.zeros_like(spp_ref)

    # ---- pass 1: a = relu(W'g.g + W'x.x - c), psi projection, psi stats ----
    @pl.when(pass_id == 1)
    def _pass1():
        gt = g_ref[0]
        xt = x_ref[0]
        # Native-dtype MXU matmuls, f32 accumulation.
        a = jnp.dot(wgf_ref[...].astype(gt.dtype), gt,
                    preferred_element_type=jnp.float32)
        a += jnp.dot(wxf_ref[...].astype(xt.dtype), xt,
                     preferred_element_type=jnp.float32)
        a = jnp.maximum(a - cbias_ref[...], 0.0)          # [F_int, TS] f32
        if use_mxu_psi:
            # wp_ref: [1, F_int] -> MXU projection (vex slot is idle here).
            p = jnp.dot(wp_ref[...].astype(jnp.float32), a,
                        preferred_element_type=jnp.float32)
        else:
            # wp_ref: [F_int, 1] -> VPU broadcast-mul + sublane reduce.
            p = jnp.sum(a * wp_ref[...].astype(jnp.float32), axis=0, keepdims=True)
        ppre_ref[0] = p                                   # lane-dense f32 stream
        if has_pad:
            lane = jax.lax.broadcasted_iota(jnp.int32, (1, tile_s), 1)
            p = jnp.where(lane < s_total - s_id * tile_s, p, 0.0)
        sp_ref[...] += jnp.sum(p, axis=1, keepdims=True)
        spp_ref[...] += jnp.sum(p * p, axis=1, keepdims=True)

    @pl.when((pass_id == 1) & (s_id == last_s))
    def _psi_stats_out():
        mu = sp_ref[...] * inv_s
        var = jnp.maximum(spp_ref[...] * inv_s - mu * mu, 0.0)
        pmu_ref[0] = mu
        pinv_ref[0] = jax.lax.rsqrt(var + EPS)


def _gate_kernel(x_ref, p_ref, pmu_ref, pinv_ref, o_ref):
    gate = jax.nn.sigmoid((p_ref[0] - pmu_ref[0]) * pinv_ref[0])  # [1, TS] f32
    o_ref[0] = (x_ref[0] * gate).astype(o_ref.dtype)


def _vmem_budgets():
    """(working-set budget, vmem_limit) in bytes, generation-aware."""
    cap = 64 * 1024 * 1024  # conservative default (v7x per-core VMEM)
    try:
        info = pltpu.get_tpu_info()
        c = getattr(info, "vmem_capacity_bytes", None)
        if c:
            cap = int(c)
    except Exception:
        pass
    work = min(int(cap * 0.60), 96 * 1024 * 1024)
    limit = min(int(cap * 0.875), 112 * 1024 * 1024)
    return work, limit


def attention_block_3d(g, x, params, *, max_s_tile=None):
    """g: [N, F_g, D, H, W], x: [N, F_l, D, H, W] (NCDHW, like PyTorch).

    params = (wg, bg, wx, bx, wp, bp) with conv weights as [Cout, Cin]
    (squeezed 1x1x1 kernels).  Biases are accepted for API parity but never
    used: each conv is followed by InstanceNorm3d(affine=False), whose mean
    subtraction cancels a per-channel constant exactly.
    """
    wg, _bg, wx, _bx, wp, _bp = params
    N, F_g, D, H, W = g.shape
    F_l = x.shape[1]
    F_int = wg.shape[0]
    S = D * H * W

    use_mxu_psi = F_int >= 32
    wp2 = wp.reshape(1, F_int) if use_mxu_psi else wp.reshape(F_int, 1)

    # --- choose a lane-dense spatial tile (generation-aware working set) ---
    in_item = jnp.dtype(x.dtype).itemsize
    work_budget, vmem_limit = _vmem_budgets()
    bytes_per_pos = (2 * in_item * (F_g + F_l)      # double-buffered g/x blocks
                     + 2 * 4                        # double-buffered p_pre out block
                     + 4 * (3 * F_int + 4))         # f32 pass-1 temporaries
    s128 = ((S + 127) // 128) * 128
    cap_pos = max(128, (work_budget // max(1, bytes_per_pos)) // 128 * 128)
    if max_s_tile is not None:
        cap_pos = max(128, min(cap_pos, (max_s_tile // 128) * 128))
    tile_s = min(s128, cap_pos)
    num_s = -(-S // tile_s)                         # cdiv
    s_pad = num_s * tile_s
    has_pad = s_pad != S

    # Reshape only (no transpose): channels on sublanes, spatial on lanes.
    g_ncs = g.reshape(N, F_g, S)
    x_ncs = x.reshape(N, F_l, S)
    if has_pad:
        g_ncs = jnp.pad(g_ncs, ((0, 0), (0, 0), (0, s_pad - S)))
        x_ncs = jnp.pad(x_ncs, ((0, 0), (0, 0), (0, s_pad - S)))

    kernel_a = functools.partial(_stats_psi_kernel, S, tile_s, has_pad, use_mxu_psi)

    # TODO(synk): for N == 1 on v7x this still runs on a single TensorCore; an
    # s-axis split across the 2 TCs (partial stats merged via CMEM) is not done.
    p_pre, p_mu, p_inv = pl.pallas_call(
        kernel_a,
        out_shape=(jax.ShapeDtypeStruct((N, 1, s_pad), jnp.float32),
                   jax.ShapeDtypeStruct((N, 1, 1), jnp.float32),
                   jax.ShapeDtypeStruct((N, 1, 1), jnp.float32)),
        grid_spec=pltpu.PrefetchScalarGridSpec(
            num_scalar_prefetch=0,
            grid=(N, 2, num_s),
            in_specs=[
                pl.BlockSpec((1, F_g, tile_s), lambda n, p, s: (n, 0, s)),
                pl.BlockSpec((1, F_l, tile_s), lambda n, p, s: (n, 0, s)),
                pl.BlockSpec((F_int, F_g), lambda n, p, s: (0, 0)),
                pl.BlockSpec((F_int, F_l), lambda n, p, s: (0, 0)),
                pl.BlockSpec(wp2.shape, lambda n, p, s: (0, 0)),
            ],
            out_specs=(
                # p_pre is only written in pass 1; park its index during pass 0
                # so no spurious HBM write-backs happen.
                pl.BlockSpec((1, 1, tile_s),
                             lambda n, p, s: (n, 0, jnp.where(p == 1, s, 0))),
                pl.BlockSpec((1, 1, 1), lambda n, p, s: (n, 0, 0)),
                pl.BlockSpec((1, 1, 1), lambda n, p, s: (n, 0, 0)),
            ),
            scratch_shapes=[
                pltpu.VMEM((F_g, F_g), jnp.float32),     # Gram(g)
                pltpu.VMEM((F_l, F_l), jnp.float32),     # Gram(x)
                pltpu.VMEM((F_g, 1), jnp.float32),       # rowsum(g)
                pltpu.VMEM((F_l, 1), jnp.float32),       # rowsum(x)
                pltpu.VMEM((F_int, F_g), jnp.float32),   # folded W_g
                pltpu.VMEM((F_int, F_l), jnp.float32),   # folded W_x
                pltpu.VMEM((F_int, 1), jnp.float32),     # folded bias
                pltpu.VMEM((1, 1), jnp.float32),         # sum psi_pre
                pltpu.VMEM((1, 1), jnp.float32),         # sum psi_pre^2
            ],
        ),
        compiler_params=pltpu.CompilerParams(
            dimension_semantics=("parallel", "arbitrary", "arbitrary"),
            vmem_limit_bytes=vmem_limit),
    )(g_ncs, x_ncs, wg, wx, wp2)

    out_pad = pl.pallas_call(
        _gate_kernel,
        out_shape=jax.ShapeDtypeStruct((N, F_l, s_pad), x.dtype),
        grid_spec=pltpu.PrefetchScalarGridSpec(
            num_scalar_prefetch=0,
            grid=(N, num_s),
            in_specs=[
                pl.BlockSpec((1, F_l, tile_s), lambda n, s: (n, 0, s)),
                pl.BlockSpec((1, 1, tile_s), lambda n, s: (n, 0, s)),
                pl.BlockSpec((1, 1, 1), lambda n, s: (n, 0, 0)),
                pl.BlockSpec((1, 1, 1), lambda n, s: (n, 0, 0)),
            ],
            out_specs=pl.BlockSpec((1, F_l, tile_s), lambda n, s: (n, 0, s)),
        ),
        compiler_params=pltpu.CompilerParams(
            dimension_semantics=("parallel", "parallel"),
            vmem_limit_bytes=vmem_limit),
    )(x_ncs, p_pre, p_mu, p_inv)

    if has_pad:
        out_pad = out_pad[:, :, :S]
    return out_pad.reshape(N, F_l, D, H, W)


def reference_forward(g, x, params):
    """Pure-JAX reference matching the PyTorch module (NCDHW, biases included)."""
    wg, bg, wx, bx, wp, bp = params  # weights [Cout, Cin]

    def conv1x1(y, w, b):
        out = jnp.einsum('ncdhw,oc->nodhw', y, w)
        return out + b.reshape(1, -1, 1, 1, 1)

    def inorm(y):
        mu = y.mean(axis=(2, 3, 4), keepdims=True)
        var = ((y - mu) ** 2).mean(axis=(2, 3, 4), keepdims=True)
        return (y - mu) / jnp.sqrt(var + EPS)

    g1 = inorm(conv1x1(g, wg, bg))
    x1 = inorm(conv1x1(x, wx, bx))
    a = jnp.maximum(g1 + x1, 0.0)
    p = jax.nn.sigmoid(inorm(conv1x1(a, wp, bp)))
    return x * p


def _run_case(key, N, F_g, F_l, F_int, D, H, W, max_s_tile=None, tol=1e-4):
    kg, kx, k1, k2, k3, k4, k5, k6 = jax.random.split(key, 8)
    g = jax.random.normal(kg, (N, F_g, D, H, W), jnp.float32)
    x = jax.random.normal(kx, (N, F_l, D, H, W), jnp.float32)
    wg = jax.random.normal(k1, (F_int, F_g), jnp.float32) * 0.2
    bg = jax.random.normal(k2, (F_int,), jnp.float32) * 0.1
    wx = jax.random.normal(k3, (F_int, F_l), jnp.float32) * 0.2
    bx = jax.random.normal(k4, (F_int,), jnp.float32) * 0.1
    wp = jax.random.normal(k5, (1, F_int), jnp.float32) * 0.2
    bp = jax.random.normal(k6, (1,), jnp.float32) * 0.1
    params = (wg, bg, wx, bx, wp, bp)

    out = attention_block_3d(g, x, params, max_s_tile=max_s_tile)
    out = jax.block_until_ready(out)
    ref = reference_forward(g, x, params)

    assert out.shape == x.shape
    err = float(jnp.max(jnp.abs(out - ref)))
    assert jnp.allclose(out, ref, atol=tol, rtol=tol), (
        f"mismatch vs reference, max abs err {err}")
    return k6


if __name__ == "__main__":
    key = jax.random.PRNGKey(0)
    # Case 1: multi-tile spatial path (S = 8^3 = 512, forced tile of 256).
    key = _run_case(key, N=2, F_g=4, F_l=4, F_int=8, D=8, H=8, W=8,
                    max_s_tile=256)
    # Case 2: small volume (S = 4^3 = 64) -> padded to one 128-lane tile.
    key = _run_case(key, N=2, F_g=4, F_l=4, F_int=8, D=4, H=4, W=4)
    # Case 3: odd volume (S = 216) with padding + multi-tile + MXU psi path.
    key = _run_case(key, N=1, F_g=8, F_l=8, F_int=32, D=6, H=6, W=6,
                    max_s_tile=128)

    print("KERNEL_OK")
</pallas_src>

<mosaic_0001>
module attributes {stable_mosaic.version = 11 : i64} {
  func.func @_stats_psi_kernel(%arg0: i32, %arg1: i32, %arg2: i32, %arg3: memref<1x4x256xf32, #tpu.memory_space<vmem>>, %arg4: memref<1x4x256xf32, #tpu.memory_space<vmem>>, %arg5: memref<8x4xf32, #tpu.memory_space<vmem>>, %arg6: memref<8x4xf32, #tpu.memory_space<vmem>>, %arg7: memref<8x1xf32, #tpu.memory_space<vmem>>, %arg8: memref<1x1x256xf32, #tpu.memory_space<vmem>>, %arg9: memref<1x1x1xf32, #tpu.memory_space<vmem>>, %arg10: memref<1x1x1xf32, #tpu.memory_space<vmem>>, %arg11: memref<4x4xf32, #tpu.memory_space<vmem>>, %arg12: memref<4x4xf32, #tpu.memory_space<vmem>>, %arg13: memref<4x1xf32, #tpu.memory_space<vmem>>, %arg14: memref<4x1xf32, #tpu.memory_space<vmem>>, %arg15: memref<8x4xf32, #tpu.memory_space<vmem>>, %arg16: memref<8x4xf32, #tpu.memory_space<vmem>>, %arg17: memref<8x1xf32, #tpu.memory_space<vmem>>, %arg18: memref<1x1xf32, #tpu.memory_space<vmem>>, %arg19: memref<1x1xf32, #tpu.memory_space<vmem>>) attributes {dimension_semantics = [#tpu.dimension_semantics<parallel>, #tpu.dimension_semantics<arbitrary>, #tpu.dimension_semantics<arbitrary>], iteration_bounds = array<i64: 2, 2, 2>, scalar_prefetch = 0 : i64, scratch_operands = 9 : i64, tpu.core_type = #tpu.core_type<tc>, window_params = [{transform_indices = @transform_0, window_bounds = array<i64: 1, 4, 256>}, {transform_indices = @transform_1, window_bounds = array<i64: 1, 4, 256>}, {pipeline_mode = #tpu.pipeline_mode<synchronous>, transform_indices = @transform_2, window_bounds = array<i64: 8, 4>}, {pipeline_mode = #tpu.pipeline_mode<synchronous>, transform_indices = @transform_3, window_bounds = array<i64: 8, 4>}, {pipeline_mode = #tpu.pipeline_mode<synchronous>, transform_indices = @transform_4, window_bounds = array<i64: 8, 1>}, {transform_indices = @transform_5, window_bounds = array<i64: 1, 1, 256>}, {transform_indices = @transform_6, window_bounds = array<i64: 1, 1, 1>}, {transform_indices = @transform_7, window_bounds = array<i64: 1, 1, 1>}]} {
    %c0_i32 = arith.constant 0 : i32
    %0 = arith.cmpi eq, %arg1, %c0_i32 : i32
    %c0_i32_0 = arith.constant 0 : i32
    %1 = arith.cmpi eq, %arg2, %c0_i32_0 : i32
    %2 = arith.andi %0, %1 : i1
    %3 = arith.extui %2 : i1 to i32
    %c0_i32_1 = arith.constant 0 : i32
    %4 = arith.cmpi ne, %3, %c0_i32_1 : i32
    scf.if %4 {
      %cst_12 = arith.constant 0.000000e+00 : f32
      %21 = vector.broadcast %cst_12 : f32 to vector<4x4xf32>
      %c0 = arith.constant 0 : index
      %c0_13 = arith.constant 0 : index
      %22 = vector.load %arg11[%c0, %c0_13] : memref<4x4xf32, #tpu.memory_space<vmem>>, vector<4x4xf32>
      tpu.vector_store %arg11[%c0, %c0_13], %21 {strides = array<i32>} : memref<4x4xf32, #tpu.memory_space<vmem>>, vector<4x4xf32>,
      %cst_14 = arith.constant 0.000000e+00 : f32
      %23 = vector.broadcast %cst_14 : f32 to vector<4x4xf32>
      %c0_15 = arith.constant 0 : index
      %c0_16 = arith.constant 0 : index
      %24 = vector.load %arg12[%c0_15, %c0_16] : memref<4x4xf32, #tpu.memory_space<vmem>>, vector<4x4xf32>
      tpu.vector_store %arg12[%c0_15, %c0_16], %23 {strides = array<i32>} : memref<4x4xf32, #tpu.memory_space<vmem>>, vector<4x4xf32>,
      %cst_17 = arith.constant 0.000000e+00 : f32
      %25 = vector.broadcast %cst_17 : f32 to vector<4x1xf32>
      %c0_18 = arith.constant 0 : index
      %c0_19 = arith.constant 0 : index
      %26 = vector.load %arg13[%c0_18, %c0_19] : memref<4x1xf32, #tpu.memory_space<vmem>>, vector<4x1xf32>
      tpu.vector_store %arg13[%c0_18, %c0_19], %25 {strides = array<i32>} : memref<4x1xf32, #tpu.memory_space<vmem>>, vector<4x1xf32>,
      %cst_20 = arith.constant 0.000000e+00 : f32
      %27 = vector.broadcast %cst_20 : f32 to vector<4x1xf32>
      %c0_21 = arith.constant 0 : index
      %c0_22 = arith.constant 0 : index
      %28 = vector.load %arg14[%c0_21, %c0_22] : memref<4x1xf32, #tpu.memory_space<vmem>>, vector<4x1xf32>
      tpu.vector_store %arg14[%c0_21, %c0_22], %27 {strides = array<i32>} : memref<4x1xf32, #tpu.memory_space<vmem>>, vector<4x1xf32>,
    } else {
    }
    %c0_i32_2 = arith.constant 0 : i32
    %5 = arith.cmpi eq, %arg1, %c0_i32_2 : i32
    %6 = arith.extui %5 : i1 to i32
    %c0_i32_3 = arith.constant 0 : i32
    %7 = arith.cmpi ne, %6, %c0_i32_3 : i32
    scf.if %7 {
      %c0 = arith.constant 0 : index
      %c0_12 = arith.constant 0 : index
      %c0_13 = arith.constant 0 : index
      %21 = vector.load %arg3[%c0, %c0_12, %c0_13] : memref<1x4x256xf32, #tpu.memory_space<vmem>>, vector<1x4x256xf32>
      %22 = vector.shape_cast %21 : vector<1x4x256xf32> to vector<4x256xf32>
      %c0_14 = arith.constant 0 : index
      %c0_15 = arith.constant 0 : index
      %c0_16 = arith.constant 0 : index
      %23 = vector.load %arg4[%c0_14, %c0_15, %c0_16] : memref<1x4x256xf32, #tpu.memory_space<vmem>>, vector<1x4x256xf32>
      %24 = vector.shape_cast %23 : vector<1x4x256xf32> to vector<4x256xf32>
      %c0_17 = arith.constant 0 : index
      %c0_18 = arith.constant 0 : index
      %25 = vector.load %arg11[%c0_17, %c0_18] : memref<4x4xf32, #tpu.memory_space<vmem>>, vector<4x4xf32>
      %cst_19 = arith.constant dense<0.000000e+00> : vector<4x4xf32>
      %26 = tpu.matmul %22, %22, %cst_19 {dimension_numbers = #tpu.dot_dimension_numbers<[1], [1], [0], [0], [0, 0, 1, 0], [], []>} : vector<4x256xf32>, vector<4x256xf32>, vector<4x4xf32> -> vector<4x4xf32>
      %27 = arith.addf %25, %26 : vector<4x4xf32>
      %c0_20 = arith.constant 0 : index
      %c0_21 = arith.constant 0 : index
      %28 = vector.load %arg11[%c0_20, %c0_21] : memref<4x4xf32, #tpu.memory_space<vmem>>, vector<4x4xf32>
      tpu.vector_store %arg11[%c0_20, %c0_21], %27 {strides = array<i32>} : memref<4x4xf32, #tpu.memory_space<vmem>>, vector<4x4xf32>,
      %c0_22 = arith.constant 0 : index
      %c0_23 = arith.constant 0 : index
      %29 = vector.load %arg12[%c0_22, %c0_23] : memref<4x4xf32, #tpu.memory_space<vmem>>, vector<4x4xf32>
      %cst_24 = arith.constant dense<0.000000e+00> : vector<4x4xf32>
      %30 = tpu.matmul %24, %24, %cst_24 {dimension_numbers = #tpu.dot_dimension_numbers<[1], [1], [0], [0], [0, 0, 1, 0], [], []>} : vector<4x256xf32>, vector<4x256xf32>, vector<4x4xf32> -> vector<4x4xf32>
      %31 = arith.addf %29, %30 : vector<4x4xf32>
      %c0_25 = arith.constant 0 : index
      %c0_26 = arith.constant 0 : index
      %32 = vector.load %arg12[%c0_25, %c0_26] : memref<4x4xf32, #tpu.memory_space<vmem>>, vector<4x4xf32>
      tpu.vector_store %arg12[%c0_25, %c0_26], %31 {strides = array<i32>} : memref<4x4xf32, #tpu.memory_space<vmem>>, vector<4x4xf32>,
      %c0_27 = arith.constant 0 : index
      %c0_28 = arith.constant 0 : index
      %33 = vector.load %arg13[%c0_27, %c0_28] : memref<4x1xf32, #tpu.memory_space<vmem>>, vector<4x1xf32>
      %cst_29 = arith.constant dense<0.000000e+00> : vector<4xf32>
      %34 = vector.multi_reduction <add>, %22, %cst_29 [1] : vector<4x256xf32> to vector<4xf32>
      %35 = vector.shape_cast %34 : vector<4xf32> to vector<4x1xf32>
      %36 = arith.addf %33, %35 : vector<4x1xf32>
      %c0_30 = arith.constant 0 : index
      %c0_31 = arith.constant 0 : index
      %37 = vector.load %arg13[%c0_30, %c0_31] : memref<4x1xf32, #tpu.memory_space<vmem>>, vector<4x1xf32>
      tpu.vector_store %arg13[%c0_30, %c0_31], %36 {strides = array<i32>} : memref<4x1xf32, #tpu.memory_space<vmem>>, vector<4x1xf32>,
      %c0_32 = arith.constant 0 : index
      %c0_33 = arith.constant 0 : index
      %38 = vector.load %arg14[%c0_32, %c0_33] : memref<4x1xf32, #tpu.memory_space<vmem>>, vector<4x1xf32>
      %cst_34 = arith.constant dense<0.000000e+00> : vector<4xf32>
      %39 = vector.multi_reduction <add>, %24, %cst_34 [1] : vector<4x256xf32> to vector<4xf32>
      %40 = vector.shape_cast %39 : vector<4xf32> to vector<4x1xf32>
      %41 = arith.addf %38, %40 : vector<4x1xf32>
      %c0_35 = arith.constant 0 : index
      %c0_36 = arith.constant 0 : index
      %42 = vector.load %arg14[%c0_35, %c0_36] : memref<4x1xf32, #tpu.memory_space<vmem>>, vector<4x1xf32>
      tpu.vector_store %arg14[%c0_35, %c0_36], %41 {strides = array<i32>} : memref<4x1xf32, #tpu.memory_space<vmem>>, vector<4x1xf32>,
    } else {
    }
    %c1_i32 = arith.constant 1 : i32
    %8 = arith.cmpi eq, %arg1, %c1_i32 : i32
    %c0_i32_4 = arith.constant 0 : i32
    %9 = arith.cmpi eq, %arg2, %c0_i32_4 : i32
    %10 = arith.andi %8, %9 : i1
    %11 = arith.extui %10 : i1 to i32
    %cst = arith.constant 0.001953125 : f32
    %c0_i32_5 = arith.constant 0 : i32
    %12 = arith.cmpi ne, %11, %c0_i32_5 : i32
    scf.if %12 {
      %c0 = arith.constant 0 : index
      %c0_12 = arith.constant 0 : index
      %21 = vector.load %arg5[%c0, %c0_12] : memref<8x4xf32, #tpu.memory_space<vmem>>, vector<8x4xf32>
      %c0_13 = arith.constant 0 : index
      %c0_14 = arith.constant 0 : index
      %22 = vector.load %arg6[%c0_13, %c0_14] : memref<8x4xf32, #tpu.memory_space<vmem>>, vector<8x4xf32>
      %c0_15 = arith.constant 0 : index
      %c0_16 = arith.constant 0 : index
      %23 = vector.load %arg13[%c0_15, %c0_16] : memref<4x1xf32, #tpu.memory_space<vmem>>, vector<4x1xf32>
      %cst_17 = arith.constant dense<0.000000e+00> : vector<8x1xf32>
      %24 = tpu.matmul %21, %23, %cst_17 {dimension_numbers = #tpu.dot_dimension_numbers<[1], [0], [0], [1], [0, 0, 1, 1], [], []>} : vector<8x4xf32>, vector<4x1xf32>, vector<8x1xf32> -> vector<8x1xf32>
      %c0_18 = arith.constant 0 : index
      %c0_19 = arith.constant 0 : index
      %25 = vector.load %arg14[%c0_18, %c0_19] : memref<4x1xf32, #tpu.memory_space<vmem>>, vector<4x1xf32>
      %cst_20 = arith.constant dense<0.000000e+00> : vector<8x1xf32>
      %26 = tpu.matmul %22, %25, %cst_20 {dimension_numbers = #tpu.dot_dimension_numbers<[1], [0], [0], [1], [0, 0, 1, 1], [], []>} : vector<8x4xf32>, vector<4x1xf32>, vector<8x1xf32> -> vector<8x1xf32>
      %c0_21 = arith.constant 0 : index
      %c0_22 = arith.constant 0 : index
      %27 = vector.load %arg11[%c0_21, %c0_22] : memref<4x4xf32, #tpu.memory_space<vmem>>, vector<4x4xf32>
      %cst_23 = arith.constant dense<0.000000e+00> : vector<8x4xf32>
      %28 = tpu.matmul %21, %27, %cst_23 {dimension_numbers = #tpu.dot_dimension_numbers<[1], [0], [0], [1], [0, 0, 1, 1], [], []>} : vector<8x4xf32>, vector<4x4xf32>, vector<8x4xf32> -> vector<8x4xf32>
      %29 = arith.mulf %28, %21 : vector<8x4xf32>
      %cst_24 = arith.constant dense<0.000000e+00> : vector<8xf32>
      %30 = vector.multi_reduction <add>, %29, %cst_24 [1] : vector<8x4xf32> to vector<8xf32>
      %31 = vector.shape_cast %30 : vector<8xf32> to vector<8x1xf32>
      %c0_25 = arith.constant 0 : index
      %c0_26 = arith.constant 0 : index
      %32 = vector.load %arg12[%c0_25, %c0_26] : memref<4x4xf32, #tpu.memory_space<vmem>>, vector<4x4xf32>
      %cst_27 = arith.constant dense<0.000000e+00> : vector<8x4xf32>
      %33 = tpu.matmul %22, %32, %cst_27 {dimension_numbers = #tpu.dot_dimension_numbers<[1], [0], [0], [1], [0, 0, 1, 1], [], []>} : vector<8x4xf32>, vector<4x4xf32>, vector<8x4xf32> -> vector<8x4xf32>
      %34 = arith.mulf %33, %22 : vector<8x4xf32>
      %cst_28 = arith.constant dense<0.000000e+00> : vector<8xf32>
      %35 = vector.multi_reduction <add>, %34, %cst_28 [1] : vector<8x4xf32> to vector<8xf32>
      %36 = vector.shape_cast %35 : vector<8xf32> to vector<8x1xf32>
      %37 = vector.broadcast %cst : f32 to vector<8x1xf32>
      %38 = arith.mulf %24, %37 : vector<8x1xf32>
      %39 = vector.broadcast %cst : f32 to vector<8x1xf32>
      %40 = arith.mulf %26, %39 : vector<8x1xf32>
      %41 = vector.broadcast %cst : f32 to vector<8x1xf32>
      %42 = arith.mulf %31, %41 : vector<8x1xf32>
      %43 = arith.mulf %38, %38 : vector<8x1xf32>
      %44 = arith.subf %42, %43 : vector<8x1xf32>
      %cst_29 = arith.constant 0.000000e+00 : f32
      %45 = vector.broadcast %cst_29 : f32 to vector<8x1xf32>
      %46 = arith.maximumf %44, %45 : vector<8x1xf32>
      %47 = vector.broadcast %cst : f32 to vector<8x1xf32>
      %48 = arith.mulf %36, %47 : vector<8x1xf32>
      %49 = arith.mulf %40, %40 : vector<8x1xf32>
      %50 = arith.subf %48, %49 : vector<8x1xf32>
      %cst_30 = arith.constant 0.000000e+00 : f32
      %51 = vector.broadcast %cst_30 : f32 to vector<8x1xf32>
      %52 = arith.maximumf %50, %51 : vector<8x1xf32>
      %cst_31 = arith.constant 9.99999974E-6 : f32
      %53 = vector.broadcast %cst_31 : f32 to vector<8x1xf32>
      %54 = arith.addf %46, %53 : vector<8x1xf32>
      %55 = math.rsqrt %54 : vector<8x1xf32>
      %cst_32 = arith.constant 9.99999974E-6 : f32
      %56 = vector.broadcast %cst_32 : f32 to vector<8x1xf32>
      %57 = arith.addf %52, %56 : vector<8x1xf32>
      %58 = math.rsqrt %57 : vector<8x1xf32>
      %59 = vector.broadcast %55 : vector<8x1xf32> to vector<8x4xf32>
      %60 = arith.mulf %59, %21 : vector<8x4xf32>
      %c0_33 = arith.constant 0 : index
      %c0_34 = arith.constant 0 : index
      %61 = vector.load %arg15[%c0_33, %c0_34] : memref<8x4xf32, #tpu.memory_space<vmem>>, vector<8x4xf32>
      tpu.vector_store %arg15[%c0_33, %c0_34], %60 {strides = array<i32>} : memref<8x4xf32, #tpu.memory_space<vmem>>, vector<8x4xf32>,
      %62 = vector.broadcast %58 : vector<8x1xf32> to vector<8x4xf32>
      %63 = arith.mulf %62, %22 : vector<8x4xf32>
      %c0_35 = arith.constant 0 : index
      %c0_36 = arith.constant 0 : index
      %64 = vector.load %arg16[%c0_35, %c0_36] : memref<8x4xf32, #tpu.memory_space<vmem>>, vector<8x4xf32>
      tpu.vector_store %arg16[%c0_35, %c0_36], %63 {strides = array<i32>} : memref<8x4xf32, #tpu.memory_space<vmem>>, vector<8x4xf32>,
      %65 = arith.mulf %55, %38 : vector<8x1xf32>
      %66 = arith.mulf %58, %40 : vector<8x1xf32>
      %67 = arith.addf %65, %66 : vector<8x1xf32>
      %c0_37 = arith.constant 0 : index
      %c0_38 = arith.constant 0 : index
      %68 = vector.load %arg17[%c0_37, %c0_38] : memref<8x1xf32, #tpu.memory_space<vmem>>, vector<8x1xf32>
      tpu.vector_store %arg17[%c0_37, %c0_38], %67 {strides = array<i32>} : memref<8x1xf32, #tpu.memory_space<vmem>>, vector<8x1xf32>,
      %cst_39 = arith.constant 0.000000e+00 : f32
      %69 = vector.broadcast %cst_39 : f32 to vector<1x1xf32>
      %c0_40 = arith.constant 0 : index
      %c0_41 = arith.constant 0 : index
      %70 = vector.load %arg18[%c0_40, %c0_41] : memref<1x1xf32, #tpu.memory_space<vmem>>, vector<1x1xf32>
      tpu.vector_store %arg18[%c0_40, %c0_41], %69 {strides = array<i32>} : memref<1x1xf32, #tpu.memory_space<vmem>>, vector<1x1xf32>,
      %cst_42 = arith.constant 0.000000e+00 : f32
      %71 = vector.broadcast %cst_42 : f32 to vector<1x1xf32>
      %c0_43 = arith.constant 0 : index
      %c0_44 = arith.constant 0 : index
      %72 = vector.load %arg19[%c0_43, %c0_44] : memref<1x1xf32, #tpu.memory_space<vmem>>, vector<1x1xf32>
      tpu.vector_store %arg19[%c0_43, %c0_44], %71 {strides = array<i32>} : memref<1x1xf32, #tpu.memory_space<vmem>>, vector<1x1xf32>,
    } else {
    }
    %c1_i32_6 = arith.constant 1 : i32
    %13 = arith.cmpi eq, %arg1, %c1_i32_6 : i32
    %14 = arith.extui %13 : i1 to i32
    %c0_i32_7 = arith.constant 0 : i32
    %15 = arith.cmpi ne, %14, %c0_i32_7 : i32
    scf.if %15 {
      %c0 = arith.constant 0 : index
      %c0_12 = arith.constant 0 : index
      %c0_13 = arith.constant 0 : index
      %21 = vector.load %arg3[%c0, %c0_12, %c0_13] : memref<1x4x256xf32, #tpu.memory_space<vmem>>, vector<1x4x256xf32>
      %22 = vector.shape_cast %21 : vector<1x4x256xf32> to vector<4x256xf32>
      %c0_14 = arith.constant 0 : index
      %c0_15 = arith.constant 0 : index
      %c0_16 = arith.constant 0 : index
      %23 = vector.load %arg4[%c0_14, %c0_15, %c0_16] : memref<1x4x256xf32, #tpu.memory_space<vmem>>, vector<1x4x256xf32>
      %24 = vector.shape_cast %23 : vector<1x4x256xf32> to vector<4x256xf32>
      %c0_17 = arith.constant 0 : index
      %c0_18 = arith.constant 0 : index
      %25 = vector.load %arg15[%c0_17, %c0_18] : memref<8x4xf32, #tpu.memory_space<vmem>>, vector<8x4xf32>
      %cst_19 = arith.constant dense<0.000000e+00> : vector<8x256xf32>
      %26 = tpu.matmul %25, %22, %cst_19 {dimension_numbers = #tpu.dot_dimension_numbers<[1], [0], [0], [1], [0, 0, 1, 1], [], []>} : vector<8x4xf32>, vector<4x256xf32>, vector<8x256xf32> -> vector<8x256xf32>
      %c0_20 = arith.constant 0 : index
      %c0_21 = arith.constant 0 : index
      %27 = vector.load %arg16[%c0_20, %c0_21] : memref<8x4xf32, #tpu.memory_space<vmem>>, vector<8x4xf32>
      %cst_22 = arith.constant dense<0.000000e+00> : vector<8x256xf32>
      %28 = tpu.matmul %27, %24, %cst_22 {dimension_numbers = #tpu.dot_dimension_numbers<[1], [0], [0], [1], [0, 0, 1, 1], [], []>} : vector<8x4xf32>, vector<4x256xf32>, vector<8x256xf32> -> vector<8x256xf32>
      %29 = arith.addf %26, %28 : vector<8x256xf32>
      %c0_23 = arith.constant 0 : index
      %c0_24 = arith.constant 0 : index
      %30 = vector.load %arg17[%c0_23, %c0_24] : memref<8x1xf32, #tpu.memory_space<vmem>>, vector<8x1xf32>
      %31 = vector.broadcast %30 : vector<8x1xf32> to vector<8x256xf32>
      %32 = arith.subf %29, %31 : vector<8x256xf32>
      %cst_25 = arith.constant 0.000000e+00 : f32
      %33 = vector.broadcast %cst_25 : f32 to vector<8x256xf32>
      %34 = arith.maximumf %32, %33 : vector<8x256xf32>
      %c0_26 = arith.constant 0 : index
      %c0_27 = arith.constant 0 : index
      %35 = vector.load %arg7[%c0_26, %c0_27] : memref<8x1xf32, #tpu.memory_space<vmem>>, vector<8x1xf32>
      %36 = vector.broadcast %35 : vector<8x1xf32> to vector<8x256xf32>
      %37 = arith.mulf %34, %36 : vector<8x256xf32>
      %cst_28 = arith.constant dense<0.000000e+00> : vector<256xf32>
      %38 = vector.multi_reduction <add>, %37, %cst_28 [0] : vector<8x256xf32> to vector<256xf32>
      %39 = vector.shape_cast %38 : vector<256xf32> to vector<1x256xf32>
      %c0_29 = arith.constant 0 : index
      %c0_30 = arith.constant 0 : index
      %c0_31 = arith.constant 0 : index
      %40 = vector.load %arg8[%c0_29, %c0_30, %c0_31] : memref<1x1x256xf32, #tpu.memory_space<vmem>>, vector<1x1x256xf32>
      %41 = vector.shape_cast %40 : vector<1x1x256xf32> to vector<1x256xf32>
      %42 = vector.shape_cast %39 : vector<1x256xf32> to vector<1x1x256xf32>
      tpu.vector_store %arg8[%c0_29, %c0_30, %c0_31], %42 {strides = array<i32>} : memref<1x1x256xf32, #tpu.memory_space<vmem>>, vector<1x1x256xf32>,
      %c0_32 = arith.constant 0 : index
      %c0_33 = arith.constant 0 : index
      %43 = vector.load %arg18[%c0_32, %c0_33] : memref<1x1xf32, #tpu.memory_space<vmem>>, vector<1x1xf32>
      %cst_34 = arith.constant dense<0.000000e+00> : vector<1xf32>
      %44 = vector.multi_reduction <add>, %39, %cst_34 [1] : vector<1x256xf32> to vector<1xf32>
      %45 = vector.shape_cast %44 : vector<1xf32> to vector<1x1xf32>
      %46 = arith.addf %43, %45 : vector<1x1xf32>
      %c0_35 = arith.constant 0 : index
      %c0_36 = arith.constant 0 : index
      %47 = vector.load %arg18[%c0_35, %c0_36] : memref<1x1xf32, #tpu.memory_space<vmem>>, vector<1x1xf32>
      tpu.vector_store %arg18[%c0_35, %c0_36], %46 {strides = array<i32>} : memref<1x1xf32, #tpu.memory_space<vmem>>, vector<1x1xf32>,
      %c0_37 = arith.constant 0 : index
      %c0_38 = arith.constant 0 : index
      %48 = vector.load %arg19[%c0_37, %c0_38] : memref<1x1xf32, #tpu.memory_space<vmem>>, vector<1x1xf32>
      %49 = arith.mulf %39, %39 : vector<1x256xf32>
      %cst_39 = arith.constant dense<0.000000e+00> : vector<1xf32>
      %50 = vector.multi_reduction <add>, %49, %cst_39 [1] : vector<1x256xf32> to vector<1xf32>
      %51 = vector.shape_cast %50 : vector<1xf32> to vector<1x1xf32>
      %52 = arith.addf %48, %51 : vector<1x1xf32>
      %c0_40 = arith.constant 0 : index
      %c0_41 = arith.constant 0 : index
      %53 = vector.load %arg19[%c0_40, %c0_41] : memref<1x1xf32, #tpu.memory_space<vmem>>, vector<1x1xf32>
      tpu.vector_store %arg19[%c0_40, %c0_41], %52 {strides = array<i32>} : memref<1x1xf32, #tpu.memory_space<vmem>>, vector<1x1xf32>,
    } else {
    }
    %c1_i32_8 = arith.constant 1 : i32
    %16 = arith.cmpi eq, %arg1, %c1_i32_8 : i32
    %c1_i32_9 = arith.constant 1 : i32
    %17 = arith.cmpi eq, %arg2, %c1_i32_9 : i32
    %18 = arith.andi %16, %17 : i1
    %19 = arith.extui %18 : i1 to i32
    %cst_10 = arith.constant 0.001953125 : f32
    %c0_i32_11 = arith.constant 0 : i32
    %20 = arith.cmpi ne, %19, %c0_i32_11 : i32
    scf.if %20 {
      %c0 = arith.constant 0 : index
      %c0_12 = arith.constant 0 : index
      %21 = vector.load %arg18[%c0, %c0_12] : memref<1x1xf32, #tpu.memory_space<vmem>>, vector<1x1xf32>
      %22 = vector.broadcast %cst_10 : f32 to vector<1x1xf32>
      %23 = arith.mulf %21, %22 : vector<1x1xf32>
      %c0_13 = arith.constant 0 : index
      %c0_14 = arith.constant 0 : index
      %24 = vector.load %arg19[%c0_13, %c0_14] : memref<1x1xf32, #tpu.memory_space<vmem>>, vector<1x1xf32>
      %25 = vector.broadcast %cst_10 : f32 to vector<1x1xf32>
      %26 = arith.mulf %24, %25 : vector<1x1xf32>
      %27 = arith.mulf %23, %23 : vector<1x1xf32>
      %28 = arith.subf %26, %27 : vector<1x1xf32>
      %cst_15 = arith.constant 0.000000e+00 : f32
      %29 = vector.broadcast %cst_15 : f32 to vector<1x1xf32>
      %30 = arith.maximumf %28, %29 : vector<1x1xf32>
      %c0_16 = arith.constant 0 : index
      %c0_17 = arith.constant 0 : index
      %c0_18 = arith.constant 0 : index
      %31 = vector.load %arg9[%c0_16, %c0_17, %c0_18] : memref<1x1x1xf32, #tpu.memory_space<vmem>>, vector<1x1x1xf32>
      %32 = vector.shape_cast %31 : vector<1x1x1xf32> to vector<1x1xf32>
      %33 = vector.shape_cast %23 : vector<1x1xf32> to vector<1x1x1xf32>
      tpu.vector_store %arg9[%c0_16, %c0_17, %c0_18], %33 {strides = array<i32>} : memref<1x1x1xf32, #tpu.memory_space<vmem>>, vector<1x1x1xf32>,
      %cst_19 = arith.constant 9.99999974E-6 : f32
      %34 = vector.broadcast %cst_19 : f32 to vector<1x1xf32>
      %35 = arith.addf %30, %34 : vector<1x1xf32>
      %36 = math.rsqrt %35 : vector<1x1xf32>
      %c0_20 = arith.constant 0 : index
      %c0_21 = arith.constant 0 : index
      %c0_22 = arith.constant 0 : index
      %37 = vector.load %arg10[%c0_20, %c0_21, %c0_22] : memref<1x1x1xf32, #tpu.memory_space<vmem>>, vector<1x1x1xf32>
      %38 = vector.shape_cast %37 : vector<1x1x1xf32> to vector<1x1xf32>
      %39 = vector.shape_cast %36 : vector<1x1xf32> to vector<1x1x1xf32>
      tpu.vector_store %arg10[%c0_20, %c0_21, %c0_22], %39 {strides = array<i32>} : memref<1x1x1xf32, #tpu.memory_space<vmem>>, vector<1x1x1xf32>,
    } else {
    }
    return
  }
  func.func @transform_0(%arg0: i32, %arg1: i32, %arg2: i32) -> (i32, i32, i32) {
    %c0_i32 = arith.constant 0 : i32
    %c0_i32_0 = arith.constant 0 : i32
    return %arg0, %c0_i32, %arg2 : i32, i32, i32
  }
  func.func @transform_1(%arg0: i32, %arg1: i32, %arg2: i32) -> (i32, i32, i32) {
    %c0_i32 = arith.constant 0 : i32
    %c0_i32_0 = arith.constant 0 : i32
    return %arg0, %c0_i32, %arg2 : i32, i32, i32
  }
  func.func @transform_2(%arg0: i32, %arg1: i32, %arg2: i32) -> (i32, i32) {
    %c0_i32 = arith.constant 0 : i32
    %c0_i32_0 = arith.constant 0 : i32
    %c0_i32_1 = arith.constant 0 : i32
    return %c0_i32, %c0_i32_0 : i32, i32
  }
  func.func @transform_3(%arg0: i32, %arg1: i32, %arg2: i32) -> (i32, i32) {
    %c0_i32 = arith.constant 0 : i32
    %c0_i32_0 = arith.constant 0 : i32
    %c0_i32_1 = arith.constant 0 : i32
    return %c0_i32, %c0_i32_0 : i32, i32
  }
  func.func @transform_4(%arg0: i32, %arg1: i32, %arg2: i32) -> (i32, i32) {
    %c0_i32 = arith.constant 0 : i32
    %c0_i32_0 = arith.constant 0 : i32
    %c0_i32_1 = arith.constant 0 : i32
    return %c0_i32, %c0_i32_0 : i32, i32
  }
  func.func @transform_5(%arg0: i32, %arg1: i32, %arg2: i32) -> (i32, i32, i32) {
    %c1_i32 = arith.constant 1 : i32
    %0 = arith.cmpi eq, %arg1, %c1_i32 : i32
    %c0_i32 = arith.constant 0 : i32
    %1 = arith.select %0, %arg2, %c0_i32 : i32
    %c0_i32_0 = arith.constant 0 : i32
    %c0_i32_1 = arith.constant 0 : i32
    return %arg0, %c0_i32_0, %1 : i32, i32, i32
  }
  func.func @transform_6(%arg0: i32, %arg1: i32, %arg2: i32) -> (i32, i32, i32) {
    %c0_i32 = arith.constant 0 : i32
    %c0_i32_0 = arith.constant 0 : i32
    %c0_i32_1 = arith.constant 0 : i32
    return %arg0, %c0_i32, %c0_i32_0 : i32, i32, i32
  }
  func.func @transform_7(%arg0: i32, %arg1: i32, %arg2: i32) -> (i32, i32, i32) {
    %c0_i32 = arith.constant 0 : i32
    %c0_i32_0 = arith.constant 0 : i32
    %c0_i32_1 = arith.constant 0 : i32
    return %arg0, %c0_i32, %c0_i32_0 : i32, i32, i32
  }
}

</mosaic_0001>

<bundles_post_ra>
// kernel: tpu_custom_call.1
= control target key start
LH: loop header
LB: loop body
LE: loop exit
PB: predicated region body
PF: predicated region fallthrough
CT: control target
= control target key end

     0   :  { %s2129_s0 = inlined_call_operand.vmem [shape: f32[2,4,512], index: 0, kind: input, shape index: {}]   ;;  %s2130_s1 = inlined_call_operand.hbm [shape: f32[2,4,512], index: 1, kind: input, shape index: {}]   ;;  %s2131_s2 = inlined_call_operand.vmem [shape: f32[8,4], index: 2, kind: input, shape index: {}]   ;;  %s2132_s3 = inlined_call_operand.vmem [shape: f32[8,4], index: 3, kind: input, shape index: {}]   ;;  %s2133_s4 = inlined_call_operand.vmem [shape: f32[8,1], index: 4, kind: input, shape index: {}]   ;;  %s2134_s5 = inlined_call_operand.hbm [shape: f32[2,1,512], index: 5, kind: output, shape index: {0}]   ;;  %s2135_s6 = inlined_call_operand.vmem [shape: f32[2,1,1], index: 6, kind: output, shape index: {1}]   ;;  %s2136_s7 = inlined_call_operand.vmem [shape: f32[2,1,1], index: 7, kind: output, shape index: {2}]  }
   0x1   :  { %2148 = sst [smem:[#allocation25_spill]] %s2130_s1 }
   0x2   :  { %2149 = sst [smem:[#allocation26_spill]] %s2131_s2 }
   0x3   :  { %2150 = sst [smem:[#allocation27_spill]] %s2132_s3 }
   0x4   :  { %2151 = sst [smem:[#allocation28_spill]] %s2133_s4 }
   0x5   :  { %2152 = sst [smem:[#allocation29_spill]] %s2134_s5 }
   0x6   :  { %13 = vsyncpa [#allocation12], 0 }
   0x7   :  { %15 = vsyncpa [#allocation12 + $0x1], 0 }
   0x8   :  { %16 = vsyncpa [#allocation13], 0 }
   0x9   :  { %18 = vsyncpa [#allocation13 + $0x1], 0  ;;  %s1781_s24 = smov 0   ;;  %s1783_s25 = smov 0  }
   0xa   :  { %s1785_s26 = smov 0   ;;  %s1787_s27 = smov 0  }
   0xb   :  { %s1789_s28 = smov 0   ;;  %s1791_s29 = smov 0  }
   0xc   :  { %s1793_s30 = smov 0   ;;  %s1795_s8 = smov 0  }
   0xd   :  { %s1797_s9 = smov 0   ;;  %s1799_s10 = smov 0  }
   0xe   :  { %s1801_s11 = smov 0   ;;  %s1803_s12 = smov 0  }
   0xf   :  { %s1805_s13 = smov 0  }
  0x10 LB: > { %2153 = sst [smem:[#allocation17_spill]] %s1702_s29  ;;  %s2137_s14 = sadd.s32 4294967295, %s1730_s13   ;;  %s1730_s13 = sphi %s1805_s13, %s24_s13   ;;  %s1726_s12 = sphi %s1803_s12, %s2188_s12   ;;  %s1722_s11 = sphi %s1801_s11, %s2195_s11   ;;  %s1718_s10 = sphi %s1799_s10, %s2186_s10   ;;  %s1714_s9 = sphi %s1797_s9, %s2185_s9   ;;  %s1710_s8 = sphi %s1795_s8, %s2184_s8   ;;  %s1706_s30 = sphi %s1793_s30, %s2183_s30   ;;  %s1702_s29 = sphi %s1791_s29, %s2182_s29   ;;  %s1698_s28 = sphi %s1789_s28, %s2194_s28   ;;  %s1694_s27 = sphi %s1787_s27, %s2193_s27   ;;  %s1690_s26 = sphi %s1785_s26, %s2192_s26   ;;  %s1686_s25 = sphi %s1783_s25, %s2191_s25   ;;  %s1682_s24 = sphi %s1781_s24, %s2190_s24  }
  0x11   : > { %2154 = sst [smem:[#allocation18_spill]] %s1718_s10  ;;  %s36_s16 = sadd.s32 1, %s1718_s10 }
  0x12   : > { %2155 = sst [smem:[#allocation19_spill]] %s1722_s11  ;;  %s39_s17 = sadd.s32 1, %s1722_s11 }
  0x13   : > { %2156 = sst [smem:[#allocation20_spill]] %s1726_s12  ;;  %p37_p0 = scmp.ge.s32.totalorder %s36_s16, 2 }
  0x14   : > { %s43_s18 = sadd.s32 1, %s1726_s12  ;;  %s80_s19 = sadd.s32 1, %s1702_s29 }
  0x15   : > { %p87_p1 = scmp.ne.s32.totalorder %s1702_s29, %s1698_s28  ;;  %s2197_s16 = smov (%p37_p0, %s36_s16), 0 }
  0x16   : > { %2157 = sst [smem:[#allocation21_spill]] %s2197_s16  ;;  %s2199_s17 = smov (!%p37_p0, %s39_s17), %s1722_s11 }
  0x17   : > { %s76_s20 = ssub.s32 %s1718_s10, %s2197_s16  ;;  %p88_p2 = scmp.eq.s32.totalorder %s1730_s13, 0 }
  0x18   : > { %p41_p3 = scmp.ge.s32.totalorder %s2199_s17, 2  ;;  %p93_p4 = scmp.ne.s32.totalorder %s1698_s28, %s1694_s27 }
  0x19   : > { %p1859_p5 = por %p88_p2, %p87_p1  ;;  %p94_p6 = scmp.eq.s32.totalorder %s2137_s14, 0 }
  0x1a   : > { %s2201_s17 = smov (%p41_p3, %s2199_s17), 0  ;;  %s2203_s18 = smov (!%p41_p3, %s43_s18), %s1726_s12 }
  0x1b   : > { %2159 = sst [smem:[#allocation22_spill]] %s2201_s17  ;;  %p1868_p7 = por %p94_p6, %p93_p4 }
  0x1c   : > { %p166_p8 = scmp.eq.s32.totalorder %s1722_s11, 1  ;;  %p45_p9 = scmp.ge.s32.totalorder %s2203_s18, 2 }
  0x1d   : > { %p168_p10 = scmp.eq.s32.totalorder %s2201_s17, 1  ;;  %s175_s14 = sadd.s32 1, %s1690_s26 }
  0x1e   : > { %s167_s23 = scalar_select %p166_p8, %s1718_s10, 0 }
  0x1f   : > { %s2205_s18 = smov (%p45_p9, %s2203_s18), 0  ;;  %p185_p13 = scmp.ne.s32.totalorder %s1690_s26, %s1686_s25 }
  0x20   : > { %2161 = sst [smem:[#allocation23_spill]] %s2205_s18  ;;  %s75_s15 = ssub.s32 %s1726_s12, %s2205_s18 }
  0x21   : > { %s169_s27 = scalar_select %p168_p10, %s2197_s16, 0 }
  0x22   : > { %s77_s5 = sor.u32 %s76_s20, %s75_s15  ;;  %s2163_s2 = sadd.s32 4294967295, %s1730_s13  }
  0x23   : > { %s171_s4 = ssub.s32 %s167_s23, %s169_s27  ;;  %p78_p11 = scmp.eq.s32.totalorder %s77_s5, 0 }
  0x24   : > { %s172_s11 = sor.u32 %s171_s4, %s75_s15  ;;  %p186_p0 = scmp.eq.s32.totalorder %s2163_s2, 7 }
  0x25   : > { %p173_p12 = scmp.eq.s32.totalorder %s172_s11, 0  ;;  %p191_p1 = scmp.ne.s32.totalorder %s1686_s25, %s1682_s24 }
  0x26   : > { %s1884_s3 = scalar_select %p78_p11, %s1702_s29, %s80_s19  }
  0x27   : > { %s1887_s17 = scalar_select %p173_p12, %s1690_s26, %s175_s14  }
  0x28   : > { %2162 = sst [smem:[#allocation24_spill]] %s1884_s3  ;;  %s2164_s16 = sadd.s32 4294967294, %s1730_s13  }
  0x29   : > { %p192_p2 = scmp.eq.s32.totalorder %s2164_s16, 7  ;;  %p1895_p3 = por %p186_p0, %p185_p13 }
  0x2a   : > { %p1436_p4 = scmp.lt.s32.totalorder %s1730_s13, 8  ;;  %s286_s5 = sand.u32 1, %s1702_s29  }
  0x2b   : > { %s2165_s20 = scalar_select %p1895_p3, 1, 0 }
  0x2c   : > { %p1900_p6 = por %p192_p2, %p191_p1  ;;  %s1362_s11 = sshll.u32 %s286_s5, 3 }
  0x2d   : > { %s1363_s14 = sshll.u32 %s1718_s10, 1  ;;  %s1364_s15 = sshll.u32 %s1726_s12, 2 }
  0x2e   : > { %s2166_s4 = scalar_select %p1900_p6, 1, 0 }
  0x2f   : > { %s290_s19 = scalar_lea.vmem [#allocation11], %s1362_s11  ;;  %s296_s23 = sadd.s32 %s1364_s15, %s1363_s14 }
  0x30   : > { %s300_s2 = sshll.u32 %s290_s19, 4  ;;  %s1365_s16 = sshll.u32 %s296_s23, 6  ;;  %s1907_s2 = int_to_ptr.vmem [resolvable:$true] %s300_s2 }
  0x31   : > { %p1911_p8 = pnand %p1436_p4, %p1859_p5  ;;  %s2168_s1 = sld [smem:[#allocation25_spill]] }
  0x32   : > { %s287_s11 = scalar_lea.sflag [#allocation12], %s286_s5 }
  0x33   : > { %p1564_p5 = pneg %p1911_p8 }
  0x37   : > { %s1918_s29 = scalar_lea.hbm %s2168_s1, %s1365_s16  ;;  %s1567_s21 = scalar_lea.hbm %s2168_s1, 512 }
  0x38   : > { %s1562_s14 = scalar_lea.hbm %s1918_s29, 128  ;;  %p1568_p0 = scmp.lt.u32.totalorder %s1918_s29, %s2168_s1 }
  0x39   : > { %p1563_p11 = scmp.ne.s32.totalorder %s1918_s29, %s1562_s14  ;;  %p1569_p1 = scmp.lt.u32.totalorder %s1567_s21, %s1562_s14 }
  0x3a   : > { %p1571_p4 = scmp.lt.u32.totalorder %s1562_s14, %s1918_s29 }
  0x3b   : > { %p1565_p12 = pnand %p1564_p5, %p1563_p11  ;;  %p1570_p2 = por %p1569_p1, %p1568_p0 }
  0x3d   : > { %p1566_p13 = pneg %p1565_p12  ;;  %p1572_p9 = por %p1571_p4, %p1570_p2 }
  0x3f   : > { %p1573_p10 = pnand %p1572_p9, %p1566_p13 }
  0x41   : > { %1576 = shalt.err (!%p1573_p10)
}
  0x42   : > { %s1577_s5 = scalar_lea.vmem %s1907_s2, 128  ;;  %s1732_s23 = smov [#allocation11]  }
  0x43   : > { %p1578_p11 = scmp.ne.s32.totalorder %s1907_s2, %s1577_s5  ;;  %s1582_s16 = sshll.u32 %s1732_s23, 4  ;;  %s1583_s16 = int_to_ptr.vmem [resolvable:$false] %s1582_s16 }
  0x44   : > { %s1584_s3 = scalar_lea.vmem %s1583_s16, 256  ;;  %p1585_p3 = scmp.lt.s32.totalorder %s1907_s2, %s1583_s16 }
  0x45   : > { %p1580_p12 = pnand %p1578_p11, %p1564_p5  ;;  %p1586_p0 = scmp.lt.s32.totalorder %s1584_s3, %s1577_s5 }
  0x47   : > { %p1581_p6 = pneg %p1580_p12  ;;  %p1587_p1 = por %p1586_p0, %p1585_p3 }
  0x49   : > { %p1588_p2 = pnand %p1587_p1, %p1581_p6 }
  0x4b   : > { %1591 = shalt.err (!%p1588_p2)
}
  0x4c   : > { %1431 = dma.hbm_to_vmem [thread:$0]  (!%p1911_p8), %s1918_s29, 128, %s1907_s2, %s287_s11  }
  0x4d   : > { %p2169_p9 = scmp.lt.s32.totalorder %s1730_s13, 9  ;;  %p2170_p10 = scmp.ge.s32.totalorder %s1730_s13, 1 }
  0x4f   : > { %p306_p5 = pnand %p2170_p10, %p2169_p9 }
  0x50   : > { %s311_s14 = sand.u32 (!%p306_p5), 1, %s1698_s28  }
  0x51   : > { %309 = sbr.rel (%p306_p5) target bundleno = 1302 (0x516), region = 40  ;;  %s1952_s18 = sshll.u32 (!%p306_p5), %s311_s14, 3 }
  0x52   : > { %s312_s21 = scalar_lea.sflag (!%p306_p5), [#allocation12], %s311_s14 }
  0x58   : > { %1673 = dma.done.wait (%p1868_p7), %s312_s21, 128  }
  0x59   : > { %1675 = vsyncadd (%p1868_p7), %s312_s21, 4294967168  ;;  %s2145_s29 = sand.u32 1, %s1686_s25   ;;  %s1369_s2 = sshll.u32 %s1706_s30, 1 }
  0x5a   : > { %s1963_s27 = sshll.u32 %s2145_s29, 1  ;;  %p362_p3 = scmp.lt.s32.totalorder %s1714_s9, 1 }
  0x5b   : > { %p364_p6 = scmp.lt.s32.totalorder %s1369_s2, 3  ;;  %p381_p7 = scmp.eq.s32.totalorder %s1710_s8, 0 }
  0x5c   : > { %s1967_s11 = scalar_select %p362_p3, %s1714_s9, 1 }
  0x5d   : > { %s2207_s2 = smov (!%p364_p6, %s1369_s2), 3  ;;  %p382_p8 = scmp.eq.s32.totalorder %s1706_s30, 0 }
  0x5e   : > { %s1370_s22 = sshll.u32 %s1967_s11, 2  ;;  %s377_s23 = scalar_lea.vmem %s2135_s6, %s1967_s11 }
  0x5f   : > { %s367_s16 = sadd.s32 %s1370_s22, %s2207_s2  ;;  %s380_s21 = scalar_lea.vmem %s2136_s7, %s1967_s11 }
  0x60   : > { %s1371_s29 = sshll.u32 %s367_s16, 2  ;;  %p383_p13 = pnand %p382_p8, %p381_p7 }
  0x61   : > { %s1982_s12 = scalar_lea.vmem %s2129_s0, %s1371_s29  ;;  %s350_s10 = scalar_lea.vmem [#allocation14], %s1963_s27  ;;  %vm387_vm0 = vcmask (!%p383_p13), 27648   ;;  %vm390_vm1 = vcmask (!%p383_p13), 3072   ;;  %v1733_v0 = vmov (!%p383_p13), 0.0  }
  0x62   : > { %386 = sbr.rel (%p383_p13) target bundleno = 105 (0x69), region = 48  ;;  %388 = vst.msk [vmem:[#allocation2] sm:$0xf] (!%p383_p13), %vm387_vm0, %v1733_v0  ;;  %389 = vst.msk [vmem:[#allocation3] sm:$0xf] (!%p383_p13), %vm387_vm0, %v1733_v0 }
  0x63   : > { %391 = vst.msk [vmem:[#allocation4] sm:$0xf] (!%p383_p13), %vm390_vm1, %v1733_v0  ;;  %392 = vst.msk [vmem:[#allocation5] sm:$0xf] (!%p383_p13), %vm390_vm1, %v1733_v0 }
  0x69 PF: > { %p1372_p4 = scmp.ne.s32.totalorder %s1710_s8, 0 }
  0x6a   : > { %v396_v1 = vld [vmem:[%s1982_s12] sm:$0xff] (!%p1372_p4)  ;;  %s2171_s1 = scalar_lea.vmem (!%p1372_p4), [#allocation11], %s1952_s18  ;;  %vm552_vm2 = vcmask (!%p1372_p4), 1043456   ;;  %v551_v11 = vld [vmem:[#allocation4] sm:$0xf] (!%p1372_p4)  ;;  %vm559_vm3 = vcmask (!%p1372_p4), 3072  }
  0x6b   : > { %395 = sbr.rel (%p1372_p4) target bundleno = 329 (0x149), region = 52  ;;  %v397_v2 = vld [vmem:[%s2171_s1] sm:$0xff] (!%p1372_p4)  ;;  %v400_v3 = vcombine.high (!%p1372_p4), %v396_v1, %v396_v1  ;;  %v553_v5 = vsel (!%p1372_p4), %vm552_vm2, %v396_v1, 0.0  ;;  %v475_v17 = vld [vmem:[#allocation3] sm:$0xf] (!%p1372_p4)  ;;  %vm473_vm4 = vcmask (!%p1372_p4), 27648  }
  0x6c   : > { %v477_v4 = vcombine.high (!%p1372_p4), %v397_v2, %v397_v2  ;;  %v562_v7 = vsel (!%p1372_p4), %vm552_vm2, %v397_v2, 0.0  ;;  %v561_v14 = vld [vmem:[#allocation5] sm:$0xf] (!%p1372_p4)  ;;  %v398_v18 = vld [vmem:[#allocation2] sm:$0xf] (!%p1372_p4) }
  0x6d   : > { %402 = vmatprep.subr.mxu0 (!%p1372_p4), %v400_v3  ;;  %v554_v6 = vsel (!%p1372_p4), %vm552_vm2, %v400_v3, 0.0  ;;  %466 = vmatprep.mubr.f32.mxu0 (!%p1372_p4), %v400_v3 }
  0x6e   : > { %479 = vmatprep.subr.mxu1 (!%p1372_p4), %v477_v4  ;;  %v563_v8 = vsel (!%p1372_p4), %vm552_vm2, %v477_v4, 0.0  ;;  %403 = vmatpush1.xpose.msra.mxu0 (!%p1372_p4), %v396_v1  ;;  %v555_v9 = vadd.f32 (!%p1372_p4), %v554_v6, %v553_v5 }
  0x6f   : > { %480 = vmatpush1.xpose.msra.mxu1 (!%p1372_p4), %v397_v2  ;;  %543 = vmatprep.mubr.f32.mxu1 (!%p1372_p4), %v477_v4  ;;  %v564_v10 = vadd.f32 (!%p1372_p4), %v563_v8, %v562_v7 }
  0x70   : > { %556 = vadd.xlane.f32.xlu0 (!%p1372_p4), %v555_v9 }
  0x71   : > { %467 = vmatmul.mubr.f32.vlgmr.msra.gmra.mrb[0].mxu0 (!%p1372_p4), %v396_v1 }
  0x72   : > { %544 = vmatmul.mubr.f32.vlgmr.msra.gmra.mrb[0].mxu1 %v397_v2 }
  0x74   : > { %565 = vadd.xlane.f32.xlu0 %v564_v10 }
  0xfd   : > { %v557_v12 = vpop.xlane.xlu0 %556 }
  0xfe   : > { %v558_v13 = vadd.f32 %v557_v12, %v551_v11 }
 0x100   : > { %560 = vst.msk [vmem:[#allocation4] sm:$0xf] %vm559_vm3, %v558_v13 }
 0x101   : > { %v566_v15 = vpop.xlane.xlu0 %565 }
 0x102   : > { %v567_v16 = vadd.f32 %v566_v15, %v561_v14 }
 0x104   : > { %568 = vst.msk [vmem:[#allocation5] sm:$0xf] %vm559_vm3, %v567_v16 }
 0x144   : > { %v468_v20 = vpop.f32.mrb[0].mxu0 }
 0x145   : > { %v545_v19 = vpop.f32.mrb[0].mxu1  ;;  %v472_v22 = vadd.f32 %v468_v20, %v398_v18  ;;  %v470_v23 = vpop.f32.mrb[1].mxu0 }
 0x146   : > { %v549_v21 = vadd.f32 %v545_v19, %v475_v17  ;;  %v547_v24 = vpop.f32.mrb[1].mxu1 }
 0x147   : > { %474 = vst.msk [vmem:[#allocation2] sm:$0xf] %vm473_vm4, %v472_v22 }
 0x148   : > { %550 = vst.msk [vmem:[#allocation3] sm:$0xf] %vm473_vm4, %v549_v21 }
 0x149 PF: > { %p569_p11 = scmp.eq.s32.totalorder %s1710_s8, 1 }
 0x14b   : > { %p570_p12 = pnand %p569_p11, %p382_p8 }
 0x14c   : > { %vm921_vm5 = vcmask (!%p570_p12), 0   ;;  %v576_v25 = vld [vmem:[#allocation4] sm:$0xf] (!%p570_p12)  ;;  %vm581_vm6 = vcmask (!%p570_p12), 1043456   ;;  %v1734_v26 = vmov (!%p570_p12), 0.0   ;;  %vm1735_vm7 = vmmov (!%p570_p12), 0  }
 0x14d   : > { %573 = sbr.rel (%p570_p12) target bundleno = 855 (0x357), region = 56  ;;  %1402 = vmatprep.subr.mxu0 (!%p570_p12), %v1734_v26  ;;  %922 = vst.msk [vmem:[#allocation9] sm:$0x1] (!%p570_p12), %vm921_vm5, %v1734_v26  ;;  %923 = vst.msk [vmem:[#allocation10] sm:$0x1] (!%p570_p12), %vm921_vm5, %v1734_v26  ;;  %1404 = vmatprep.mubr.msk.f32.mxu0 (!%p570_p12), %vm1735_vm7, %v1734_v26  ;;  %s2172_s2 = sld [smem:[#allocation26_spill]] (!%p570_p12) }
 0x14e   : > { %vm577_vm8 = vcmask (!%p570_p12), 31744   ;;  %v732_v28 = vld [vmem:[#allocation2] sm:$0xf] (!%p570_p12)  ;;  %v655_v29 = vld [vmem:[#allocation5] sm:$0xf] (!%p570_p12)  ;;  %1403 = vmatpush3.msk.msra.mxu0 (!%p570_p12), %vm581_vm6, %v576_v25  ;;  %1407 = vmatprep.subr.mxu1 (!%p570_p12), %v1734_v26  ;;  %s2173_s5 = sld [smem:[#allocation27_spill]] (!%p570_p12) }
 0x14f   : > { %1412 = vmatprep.subr.mxu0 (!%p570_p12), %v1734_v26  ;;  %1408 = vmatpush3.msk.msra.mxu1 (!%p570_p12), %vm581_vm6, %v655_v29  ;;  %v810_v31 = vld [vmem:[#allocation3] sm:$0xf] (!%p570_p12)  ;;  %v1736_v44 = vmov (!%p570_p12), 0   ;;  %vm919_vm9 = vcmask (!%p570_p12), 7168  }
 0x150   : > { %1409 = vmatprep.mubr.msk.f32.mxu1 (!%p570_p12), %vm1735_vm7, %v1734_v26  ;;  %1417 = vmatprep.subr.mxu1 (!%p570_p12), %v1734_v26 }
 0x151   : > { %1551 = vset.pattern.permute.xlu1 (!%p570_p12), %v1736_v44  ;;  %1552 = vset.pattern.permute.xlu0 (!%p570_p12), %v1736_v44 }
 0x153   : > { %v2001_v27 = vld [vmem:[%s2172_s2] sm:$0xff] (!%p570_p12) }
 0x154   : > { %1405 = vmatmul.mubr.msk.f32.vlgmr.msra.gmra.mrb[0].mxu0 %vm577_vm8, %v2001_v27  ;;  %v575_v30 = vld [vmem:[%s2173_s5] sm:$0xff] }
 0x155   : > { %1413 = vmatpush3.msk.msra.mxu0 %vm581_vm6, %v732_v28  ;;  %1414 = vmatprep.mubr.msk.f32.mxu0 %vm1735_vm7, %v1734_v26 }
 0x156   : > { %1410 = vmatmul.mubr.msk.f32.vlgmr.msra.gmra.mrb[0].mxu1 %vm577_vm8, %v575_v30 }
 0x157   : > { %1418 = vmatpush3.msk.msra.mxu1 %vm581_vm6, %v810_v31  ;;  %1419 = vmatprep.mubr.msk.f32.mxu1 %vm1735_vm7, %v1734_v26 }
 0x158   : > { %1415 = vmatmul.mubr.msk.f32.vlgmr.msra.gmra.mrb[2].mxu0 %vm577_vm8, %v2001_v27 }
 0x15a   : > { %1420 = vmatmul.mubr.msk.f32.vlgmr.msra.gmra.mrb[2].mxu1 %vm577_vm8, %v575_v30 }
 0x227   : > { %v651_v32 = vpop.f32.mrb[0].mxu0 }
 0x228   : > { %v1406_v33 = vpop.f32.mrb[1].mxu0  ;;  %v888_v45 = vmul.f32 0.001953125, %v651_v32 }
 0x229   : > { %v728_v34 = vpop.f32.mrb[0].mxu1 }
 0x22a   : > { %v1411_v36 = vpop.f32.mrb[1].mxu1  ;;  %v891_v47 = vmul.f32 %v888_v45, %v888_v45  ;;  %v889_v48 = vmul.f32 0.001953125, %v728_v34 }
 0x22b   : > { %v802_v35 = vpop.f32.mrb[2].mxu0 }
 0x22c   : > { %v806_v37 = vmul.f32 %v802_v35, %v2001_v27  ;;  %v1416_v38 = vpop.f32.mrb[3].mxu0  ;;  %v895_v52 = vmul.f32 %v889_v48, %v889_v48 }
 0x22d   : > { %v880_v39 = vpop.f32.mrb[2].mxu1 }
 0x22e   : > { %v807_v40 = vsel %vm577_vm8, %v806_v37, 0.0  ;;  %v884_v41 = vmul.f32 %v880_v39, %v575_v30  ;;  %v1421_v42 = vpop.f32.mrb[3].mxu1 }
 0x22f   : > { %808 = vadd.xlane.f32.xlu0 %v807_v40 }
 0x230   : > { %v885_v43 = vsel %vm577_vm8, %v884_v41, 0.0 }
 0x233   : > { %886 = vadd.xlane.f32.xlu0 %v885_v43 }
 0x2bc   : > { %v809_v46 = vpop.xlane.xlu0 %808 }
 0x2bd   : > { %v890_v49 = vmul.f32 0.001953125, %v809_v46 }
 0x2bf   : > { %v892_v50 = vsub.f32 %v890_v49, %v891_v47 }
 0x2c0   : > { %v887_v51 = vpop.xlane.xlu0 %886 }
 0x2c1   : > { %v893_v53 = vmax.f32 %v892_v50, 0.0  ;;  %v894_v54 = vmul.f32 0.001953125, %v887_v51 }
 0x2c3   : > { %v898_v55 = vadd.f32 1e-05, %v893_v53  ;;  %v896_v56 = vsub.f32 %v894_v54, %v895_v52 }
 0x2c5   : > { %1553 = vrsqrt.f32 %v898_v55  ;;  %v897_v57 = vmax.f32 %v896_v56, 0.0 }
 0x2c7   : > { %v900_v58 = vadd.f32 1e-05, %v897_v57 }
 0x2c9   : > { %1555 = vrsqrt.f32 %v900_v58 }
 0x2cf   : > { %v1554_v59 = vpop.eup %1553 }
 0x2d0   : > { %904 = vperm.xlu1 %1551, %v1554_v59   ;;  %v916_v61 = vmul.f32 %v1554_v59, %v888_v45 }
 0x2d3   : > { %v1556_v60 = vpop.eup %1555 }
 0x2d4   : > { %v917_v62 = vmul.f32 %v1556_v60, %v889_v48  ;;  %911 = vperm.xlu1 %1551, %v1556_v60  }
 0x2d6   : > { %v918_v63 = vadd.f32 %v917_v62, %v916_v61 }
 0x2d8   : > { %920 = vst.msk [vmem:[#allocation8] sm:$0xff] %vm919_vm9, %v918_v63 }
 0x34f   : > { %v905_v0 = vpop.permute.xlu1 %904 }
 0x350   : > { %v907_v1 = vmul.f32 %v905_v0, %v2001_v27 }
 0x352   : > { %908 = vst.msk [vmem:[#allocation6] sm:$0xff] %vm577_vm8, %v907_v1 }
 0x353   : > { %v912_v2 = vpop.permute.xlu1 %911 }
 0x354   : > { %v914_v3 = vmul.f32 %v912_v2, %v575_v30 }
 0x356   : > { %915 = vst.msk [vmem:[#allocation7] sm:$0xff] %vm577_vm8, %v914_v3 }
 0x357 PF: > { %p1381_p0 = scmp.ne.s32.totalorder %s1710_s8, 1 }
 0x358   : > { %s2174_s16 = scalar_lea.vmem (!%p1381_p0), [#allocation11], %s1952_s18  ;;  %vm937_vm10 = vcmask (!%p1381_p0), 1043456   ;;  %v927_v5 = vld [vmem:[%s1982_s12] sm:$0xff] (!%p1381_p0)  ;;  %v1737_v8 = vmov (!%p1381_p0), 0.0   ;;  %vm933_vm11 = vcmask (!%p1381_p0), 31744   ;;  %v1738_v11 = vmov (!%p1381_p0), 0  }
 0x359   : > { %926 = sbr.rel (%p1381_p0) target bundleno = 1246 (0x4de), region = 60  ;;  %v928_v4 = vld [vmem:[%s2174_s16] sm:$0xff] (!%p1381_p0)  ;;  %v1014_v7 = vcombine.high (!%p1381_p0), %v927_v5, %v927_v5  ;;  %1006 = vmatprep.mubr.f32.mxu1 (!%p1381_p0), %v1737_v8  ;;  %1086 = vmatprep.mubr.f32.mxu0 (!%p1381_p0), %v1737_v8  ;;  %v1093_v12 = vld [vmem:[#allocation8] sm:$0xff] (!%p1381_p0)  ;;  %s2175_s3 = sld [smem:[#allocation28_spill]] (!%p1381_p0)  ;;  %v1739_v32 = vmov (!%p1381_p0), 1966171168   ;;  %v1129_v34 = vlaneseq (!%p1381_p0) }
 0x35a   : > { %v932_v6 = vcombine.high (!%p1381_p0), %v928_v4, %v928_v4  ;;  %v929_v10 = vld [vmem:[#allocation6] sm:$0xff] (!%p1381_p0)  ;;  %1557 = vset.pattern.permute.xlu0 (!%p1381_p0), %v1738_v11  ;;  %v1127_v33 = vunpack.c.l.s4 (!%p1381_p0), %v1739_v32  ;;  %v1146_v53 = vld [vmem:[#allocation9] sm:$0x1] (!%p1381_p0)  ;;  %vm1151_vm13 = vcmask (!%p1381_p0), 0   ;;  %v1153_v56 = vld [vmem:[#allocation10] sm:$0x1] (!%p1381_p0) }
 0x35b   : > { %1385 = vmatprep.subr.msk.mxu0 (!%p1381_p0), %vm937_vm10, %v1014_v7  ;;  %1096 = vperm.xlu0 (!%p1381_p0), %1557, %v1093_v12   ;;  %v1130_v40 = vshrl.u32 (!%p1381_p0), %v1129_v34, 7  ;;  %vm1143_vm12 = vcmp.lt.s32.totalorder (!%p1381_p0), %v1129_v34, 256 }
 0x35c   : > { %1382 = vmatprep.subr.msk.mxu1 (!%p1381_p0), %vm937_vm10, %v932_v6  ;;  %1386 = vmatpush1.msk.msra.mxu0 (!%p1381_p0), %vm937_vm10, %v927_v5  ;;  %v1128_v39 = vunpack.c.0.s8 (!%p1381_p0), %v1127_v33 }
 0x35d   : > { %v930_v9 = vld [vmem:[#allocation7] sm:$0xff] (!%p1381_p0)  ;;  %1383 = vmatpush1.msk.msra.mxu1 (!%p1381_p0), %vm937_vm10, %v928_v4  ;;  %1387 = vmatmul.mubr.msk.f32.vlgmr.msra.gmra.mrb[0].mxu0 (!%p1381_p0), %vm933_vm11, %v929_v10 }
 0x35e   : > { %1384 = vmatmul.mubr.msk.f32.vlgmr.msra.gmra.mrb[0].mxu1 (!%p1381_p0), %vm933_vm11, %v930_v9  ;;  %v1131_v45 = vsub.s32 (!%p1381_p0), %v1128_v39, %v1130_v40 }
 0x35f   : > { %v1103_v13 = vld [vmem:[%s2175_s3] sm:$0xff] (!%p1381_p0) }
 0x360   : > { %1106 = vperm.xlu0 %1557, %v1103_v13  }
 0x3da   : > { %v1097_v14 = vpop.permute.xlu0 %1096 }
 0x3df   : > { %v1107_v24 = vpop.permute.xlu0 %1106 }
 0x430   : > { %v1088_v16 = vpop.f32.mrb[0].mxu0 }
 0x431   : > { %v1008_v15 = vpop.f32.mrb[0].mxu1  ;;  %v1090_v19 = vpop.f32.mrb[1].mxu0 }
 0x432   : > { %v1089_v17 = vadd.f32 %v1088_v16, %v1008_v15  ;;  %v1010_v18 = vpop.f32.mrb[1].mxu1 }
 0x433   : > { %v1091_v20 = vadd.f32 %v1090_v19, %v1010_v18 }
 0x434   : > { %v1099_v21 = vsub.f32 %v1089_v17, %v1097_v14 }
 0x435   : > { %v1100_v22 = vsub.f32 %v1091_v20, %v1097_v14 }
 0x436   : > { %v1101_v23 = vmax.f32 %v1099_v21, 0.0 }
 0x437   : > { %v1102_v25 = vmax.f32 %v1100_v22, 0.0 }
 0x438   : > { %v1109_v26 = vmul.f32 %v1107_v24, %v1101_v23 }
 0x439   : > { %v1110_v27 = vmul.f32 %v1107_v24, %v1102_v25 }
 0x43a   : > { %v1111_v28 = vrot.slane %v1109_v26, 4 }
 0x43b   : > { %v1117_v29 = vrot.slane %v1110_v27, 4 }
 0x43c   : > { %v1112_v30 = vadd.f32 %v1111_v28, %v1109_v26 }
 0x43d   : > { %v1118_v31 = vadd.f32 %v1117_v29, %v1110_v27 }
 0x43e   : > { %v1113_v35 = vrot.slane %v1112_v30, 2 }
 0x43f   : > { %v1119_v36 = vrot.slane %v1118_v31, 2 }
 0x440   : > { %v1114_v37 = vadd.f32 %v1113_v35, %v1112_v30 }
 0x441   : > { %v1120_v38 = vadd.f32 %v1119_v36, %v1118_v31 }
 0x442   : > { %v1115_v41 = vrot.slane %v1114_v37, 1 }
 0x443   : > { %v1121_v42 = vrot.slane %v1120_v38, 1 }
 0x444   : > { %v1116_v43 = vadd.f32 %v1115_v41, %v1114_v37 }
 0x445   : > { %v1122_v44 = vadd.f32 %v1121_v42, %v1120_v38 }
 0x446   : > { %v1154_v46 = vmul.f32 %v1116_v43, %v1116_v43 }
 0x447   : > { %v1147_v47 = vadd.f32 %v1122_v44, %v1116_v43  ;;  %v1125_v48 = vcombine.low %v1116_v43, %v1122_v44  ;;  %v1155_v49 = vmul.f32 %v1122_v44, %v1122_v44 }
 0x449   : > { %1148 = vadd.xlane.f32.xlu1 %v1147_v47  ;;  %v1132_v50 = vrot.slane %v1125_v48, %v1131_v45  ;;  %v1156_v51 = vadd.f32 %v1155_v49, %v1154_v46 }
 0x44b   : > { %v1139_v52 = vrot.slane %v1132_v50, %v1131_v45 }
 0x44d   : > { %1145 = vst.msk [vmem:[%s350_s10] sm:$0x3] %vm1143_vm12, %v1139_v52  ;;  %1157 = vadd.xlane.f32.xlu1 %v1156_v51 }
 0x4d6   : > { %v1149_v54 = vpop.xlane.xlu1 %1148 }
 0x4d7   : > { %v1150_v55 = vadd.f32 %v1149_v54, %v1146_v53 }
 0x4d9   : > { %1152 = vst.msk [vmem:[#allocation9] sm:$0x1] %vm1151_vm13, %v1150_v55 }
 0x4da   : > { %v1158_v57 = vpop.xlane.xlu1 %1157 }
 0x4db   : > { %v1159_v58 = vadd.f32 %v1158_v57, %v1153_v56 }
 0x4dd   : > { %1160 = vst.msk [vmem:[#allocation10] sm:$0x1] %vm1151_vm13, %v1159_v58 }
 0x4de PF: > { %p1161_p1 = scmp.eq.s32.totalorder %s1706_s30, 1 }
 0x4e0   : > { %p1162_p2 = pnand %p1161_p1, %p569_p11 }
 0x4e1   : > { %v1166_v59 = vld [vmem:[#allocation9] sm:$0x1] (!%p1162_p2)  ;;  %vm1173_vm14 = vcmask (!%p1162_p2), 0  }
 0x4e2   : > { %1165 = sbr.rel (%p1162_p2) target bundleno = 1273 (0x4f9), region = 64  ;;  %v1167_v61 = vmul.f32 (!%p1162_p2), 0.001953125, %v1166_v59 }
 0x4e4   : > { %v1168_v60 = vld [vmem:[#allocation10] sm:$0x1] (!%p1162_p2)  ;;  %v1170_v63 = vmul.f32 (!%p1162_p2), %v1167_v61, %v1167_v61  ;;  %1174 = vst.msk [vmem:[%s377_s23] sm:$0x1] (!%p1162_p2), %vm1173_vm14, %v1167_v61 }
 0x4e5   : > { %v1169_v62 = vmul.f32 (!%p1162_p2), 0.001953125, %v1168_v60 }
 0x4e7   : > { %v1171_v0 = vsub.f32 (!%p1162_p2), %v1169_v62, %v1170_v63 }
 0x4e9   : > { %v1172_v1 = vmax.f32 %v1171_v0, 0.0 }
 0x4eb   : > { %v1175_v2 = vadd.f32 1e-05, %v1172_v1 }
 0x4ed   : > { %1560 = vrsqrt.f32 %v1175_v2 }
 0x4f7   : > { %v1561_v3 = vpop.eup %1560 }
 0x4f8   : > { %1177 = vst.msk [vmem:[%s380_s21] sm:$0x1] %vm1173_vm14, %v1561_v3 }
 0x4f9 PF: > { %s1390_s2 = sshll.u32 %s1714_s9, 2  ;;  %s2209_s30 = smov (!%p569_p11, %s1706_s30), 0 }
 0x4fa   : > { %s1203_s23 = sshll.u32 %s350_s10, 4  ;;  %s1389_s22 = sshll.u32 %s2209_s30, 1  ;;  %s2057_s23 = int_to_ptr.vmem [resolvable:$true] %s1203_s23 }
 0x4fb   : > { %s1199_s19 = sadd.s32 %s1390_s2, %s1389_s22  ;;  %s2176_s16 = sld [smem:[#allocation29_spill]] }
 0x4fc   : > { %s1391_s11 = sshll.u32 %s1199_s19, 4  ;;  %s2177_s18 = sand.u32 1, %s1686_s25  }
 0x4fd   : > { %s1179_s3 = scalar_lea.sflag [#allocation13], %s2177_s18  ;;  %s1592_s14 = scalar_lea.vmem %s2057_s23, 32 }
 0x4fe   : > { %p1593_p9 = scmp.ne.s32.totalorder %s2057_s23, %s1592_s14  ;;  %p2178_p10 = scmp.ne.s32.totalorder %s2165_s20, 0 }
 0x4ff   : > { %s1740_s8 = smov [#allocation14]  }
 0x500   : > { %p1594_p5 = pnand %p1593_p9, %p2178_p10  ;;  %s1596_s30 = sshll.u32 %s1740_s8, 4  ;;  %s1597_s30 = int_to_ptr.vmem [resolvable:$false] %s1596_s30 }
 0x501   : > { %s1201_s12 = scalar_lea.hbm %s2176_s16, %s1391_s11  ;;  %s1598_s9 = scalar_lea.vmem %s1597_s30, 64 }
 0x502   : > { %p1595_p3 = pneg %p1594_p5  ;;  %p1599_p6 = scmp.lt.s32.totalorder %s2057_s23, %s1597_s30 }
 0x503   : > { %p1600_p7 = scmp.lt.s32.totalorder %s1598_s9, %s1592_s14 }
 0x505   : > { %p1601_p8 = por %p1600_p7, %p1599_p6 }
 0x507   : > { %p1602_p13 = pnand %p1601_p8, %p1595_p3 }
 0x509   : > { %1605 = shalt.err (!%p1602_p13)
}
 0x50a   : > { %s1606_s10 = scalar_lea.hbm %s1201_s12, 32  ;;  %s1610_s15 = scalar_lea.hbm %s2176_s16, 128 }
 0x50b   : > { %p1607_p4 = scmp.ne.s32.totalorder %s1201_s12, %s1606_s10  ;;  %p1611_p0 = scmp.lt.u32.totalorder %s1201_s12, %s2176_s16 }
 0x50c   : > { %p1612_p1 = scmp.lt.u32.totalorder %s1610_s15, %s1606_s10  ;;  %p1614_p9 = scmp.lt.u32.totalorder %s1606_s10, %s1201_s12 }
 0x50d   : > { %p1608_p11 = pnand %p1607_p4, %p2178_p10 }
 0x50e   : > { %p1613_p2 = por %p1612_p1, %p1611_p0 }
 0x50f   : > { %p1609_p12 = pneg %p1608_p11 }
 0x510   : > { %p1615_p5 = por %p1614_p9, %p1613_p2 }
 0x512   : > { %p1616_p3 = pnand %p1615_p5, %p1609_p12 }
 0x514   : > { %1619 = shalt.err (!%p1616_p3)
}
 0x515   : > { %1426 = dma.vmem_to_hbm [thread:$0]  (%p2178_p10), %s2057_s23, 32, %s1201_s12, %s1179_s3  }
 0x516 PF: > { %p1437_p6 = scmp.ge.s32.totalorder %s1730_s13, 2  ;;  %s1221_s22 = sand.u32 1, %s1682_s24  }
 0x517   : > { %p2179_p7 = scmp.ne.s32.totalorder %s2166_s4, 0  ;;  %s1222_s19 = scalar_lea.sflag [#allocation13], %s1221_s22 }
 0x519   : > { %p1433_p8 = pnand %p1437_p6, %p2179_p7 }
 0x51b   : > { %1677 = dma.done.wait (!%p1433_p8), %s1222_s19, 32  }
 0x51c   : > { %1679 = vsyncadd (!%p1433_p8), %s1222_s19, 4294967264  ;;  %s24_s13 = sadd.s32 1, %s1730_s13   ;;  %s2181_s20 = sld [smem:[#allocation17_spill]] }
 0x51d   : > { %p2085_p13 = scmp.ge.s32.totalorder %s24_s13, 10   ;;  %s2182_s29 = sld [smem:[#allocation24_spill]] }
 0x51e   : > { %s2183_s30 = sld [smem:[#allocation18_spill]]  ;;  %s2184_s8 = sld [smem:[#allocation19_spill]] }
 0x51f   : > { %s2185_s9 = sld [smem:[#allocation20_spill]]  ;;  %s2186_s10 = sld [smem:[#allocation21_spill]] }
 0x520   : > { %s2187_s4 = sld [smem:[#allocation22_spill]]  ;;  %s2188_s12 = sld [smem:[#allocation23_spill]] }
 0x521   : > { %s2190_s24 = smov %s1686_s25  ;;  %s2191_s25 = smov %s1690_s26 }
 0x522   : > { %s2192_s26 = smov %s1887_s17  ;;  %s2193_s27 = smov %s1698_s28 }
 0x523   : > { %s2194_s28 = smov %s2181_s20  ;;  %23 = sbr.rel (!%p2085_p13) target bundleno = 16 (0x10), region = 132 }
 0x526   : > { %s2195_s11 = smov %s2187_s4 }
 0x52a   :  { %1239 = vsyncpa [#allocation12], 1 }
 0x52b   :  { %1241 = vsyncpa [#allocation12 + $0x1], 1 }
 0x52c   :  { %1242 = vsyncpa [#allocation13], 1 }
 0x52d   :  { %1244 = vsyncpa [#allocation13 + $0x1], 1 }

</bundles_post_ra>
